<compile_context>
chip_gen: v7x
topology: tpu7x:2x2x1
jax: 0.10.0
libtpu: 0.0.40
codegen_flags: <defaults>
</compile_context>

<pallas_src>
import functools

import jax
import jax.numpy as jnp
from jax import lax
from jax.experimental import pallas as pl
from jax.experimental.pallas import tpu as pltpu


def _dice_sums_kernel(logits_ref, labels_ref, inter_ref, total_ref, *, hw, has_tail):
    """Accumulate per-(image, class) dice partial sums across spatial tiles.

    logits_ref: (bi, C, tm) logits -- classes on sublanes, pixels on lanes
    labels_ref: (bi, 1, tm) int8/int32 class index per pixel
    inter_ref:  (bi, C, 1) f32 resident accumulator: sum_pixels probs * onehot
    total_ref:  (bi, C, 1) f32 resident accumulator: sum_pixels (probs + onehot)
    """
    bi, c, tm = logits_ref.shape
    t = pl.program_id(1)
    n_t = pl.num_programs(1)

    @pl.when(t == 0)
    def _():
        inter_ref[...] = jnp.zeros_like(inter_ref)
        total_ref[...] = jnp.zeros_like(total_ref)

    def body(apply_mask):
        class_ids = lax.broadcasted_iota(jnp.int32, (c, tm), 0)
        if apply_mask:
            lane = lax.broadcasted_iota(jnp.int32, (1, tm), 1)
            valid = (t * tm + lane) < hw          # mask pixels past the true H*W

        for b in range(bi):                       # static unroll over folded images
            x = logits_ref[b]                     # (c, tm), native dtype
            lbl = labels_ref[b].astype(jnp.int32)  # (1, tm)

            # Numerically-stable per-pixel softmax over the class (sublane) axis.
            m = jnp.max(x, axis=0, keepdims=True)
            e = jnp.exp(x - m)
            denom = jnp.sum(e.astype(jnp.float32), axis=0, keepdims=True)
            inv = pl.reciprocal(denom, approx=True)        # EUP, ~2^-12 rel err
            probs = e * inv.astype(x.dtype)                # (c, tm)

            onehot = jnp.where(class_ids == lbl, 1.0, 0.0).astype(x.dtype)

            if apply_mask:
                probs = jnp.where(valid, probs, 0.0)       # NaN-safe select
                onehot = jnp.where(valid, onehot, 0.0)

            # Per-step lane reduction (XLU) into the tiny resident accumulators.
            inter_ref[b] = inter_ref[b] + jnp.sum(
                (probs * onehot).astype(jnp.float32), axis=1, keepdims=True)
            total_ref[b] = total_ref[b] + jnp.sum(
                (probs + onehot).astype(jnp.float32), axis=1, keepdims=True)

    if has_tail:
        # Unmasked hot path for all full tiles; mask only the final partial tile.
        @pl.when(t < n_t - 1)
        def _():
            body(False)

        @pl.when(t == n_t - 1)
        def _():
            body(True)
    else:
        body(False)


def dice_loss_pallas(outputs, labels, epsilon=1e-6):
    """outputs: (N, C, H, W) float logits (NCHW); labels: (N, H, W) int class ids.
       Returns scalar f32 dice loss = 1 - mean dice over (N, C)."""
    n, c, h, w = outputs.shape
    hw = h * w

    # Native NCHW layout flattened spatially; reshape is free (contiguous).
    logits = outputs.reshape(n, c, hw)
    # Narrow label dtype: 4x less label HBM traffic when C fits in int8.
    lbl_dtype = jnp.int8 if c <= 127 else jnp.int32
    lbls = labels.astype(lbl_dtype).reshape(n, 1, hw)

    itemsize = jnp.dtype(outputs.dtype).itemsize
    c_pad = ((c + 7) // 8) * 8                       # sublane-padded class count
    hw_pad = ((hw + 127) // 128) * 128

    # Lane budget (= bi * tm) from sublane-PADDED VMEM footprints:
    #   2x double-buffered logits blocks (c_pad rows) + 2x label blocks
    #   (32 B/lane after sublane padding, same for int8 and int32) + ~8 live
    #   full-tile f32 temporaries. Kept under ~20 MiB so the explicit 32 MiB
    #   vmem_limit_bytes below has headroom on every chip (v7x: 64 MiB phys).
    bytes_per_lane = 2 * (c_pad * itemsize + 32) + 8 * c_pad * 4
    lane_budget = (20 << 20) // bytes_per_lane
    # ...while moving ~2 MiB of logits per grid step (past the ~85% HBM knee,
    # amortizes the ~0.35 us per-step overhead).
    lane_budget = min(lane_budget, (2 << 20) // (itemsize * c))
    lane_budget = max(128, (lane_budget // 128) * 128)

    if hw_pad <= lane_budget:
        # Small images: whole image per tile, fold several images per step.
        tm = hw_pad
        bi = int(max(1, min(n, lane_budget // hw_pad, 8)))
    else:
        tm = int(lane_budget)
        bi = 1

    grid_b = pl.cdiv(n, bi)
    grid_t = pl.cdiv(hw, tm)
    has_tail = (hw % tm) != 0          # only the last spatial tile needs masking

    kernel = functools.partial(_dice_sums_kernel, hw=hw, has_tail=has_tail)

    inter, total = pl.pallas_call(
        kernel,
        out_shape=(
            jax.ShapeDtypeStruct((n, c, 1), jnp.float32),
            jax.ShapeDtypeStruct((n, c, 1), jnp.float32),
        ),
        grid_spec=pltpu.PrefetchScalarGridSpec(
            num_scalar_prefetch=0,
            grid=(grid_b, grid_t),
            in_specs=[
                pl.BlockSpec((bi, c, tm), lambda i, t: (i, 0, t)),
                pl.BlockSpec((bi, 1, tm), lambda i, t: (i, 0, t)),
            ],
            out_specs=[
                pl.BlockSpec((bi, c, 1), lambda i, t: (i, 0, 0)),
                pl.BlockSpec((bi, c, 1), lambda i, t: (i, 0, 0)),
            ],
        ),
        compiler_params=pltpu.CompilerParams(
            dimension_semantics=("parallel", "arbitrary"),
            vmem_limit_bytes=32 * 1024 * 1024,
        ),
    )(logits, lbls)

    # TODO(synk): optional v7x-only second "parallel" split of spatial tiles for
    # N=1 inference calls (both TensorCores busy); omitted to keep one code path.
    inter = 2.0 * inter[..., 0]        # (N, C)
    total = total[..., 0]              # (N, C)
    dice = (inter + epsilon) / (total + epsilon)
    return 1.0 - jnp.mean(dice)


def dice_loss_ref(outputs, labels, epsilon=1e-6):
    """Pure-JAX reference matching the PyTorch dice_loss."""
    c = outputs.shape[1]
    probs = jax.nn.softmax(outputs.astype(jnp.float32), axis=1)
    onehot = jax.nn.one_hot(labels, c, dtype=jnp.float32)          # (N, H, W, C)
    onehot = jnp.transpose(onehot, (0, 3, 1, 2))                   # (N, C, H, W)
    intersect = 2.0 * jnp.sum(probs * onehot, axis=(2, 3))
    total = jnp.sum(probs, axis=(2, 3)) + jnp.sum(onehot, axis=(2, 3))
    dice = (intersect + epsilon) / (total + epsilon)
    return 1.0 - jnp.mean(dice)


if __name__ == "__main__":
    key = jax.random.PRNGKey(0)
    k1, k2 = jax.random.split(key)

    N, C, H, W = 2, 4, 16, 16
    outputs = jax.random.normal(k1, (N, C, H, W), dtype=jnp.float32)
    labels = jax.random.randint(k2, (N, H, W), 0, C, dtype=jnp.int32)

    loss = jax.block_until_ready(dice_loss_pallas(outputs, labels))
    ref = dice_loss_ref(outputs, labels)

    # pl.reciprocal(approx=True) has ~2^-12 relative error -> loosened tolerance.
    assert jnp.allclose(loss, ref, rtol=1e-3, atol=1e-3), (loss, ref)

    print("KERNEL_OK")
</pallas_src>

<mosaic_0001>
module attributes {stable_mosaic.version = 11 : i64} {
  func.func @_dice_sums_kernel(%arg0: i32, %arg1: i32, %arg2: memref<2x4x256xf32, #tpu.memory_space<vmem>>, %arg3: memref<2x1x256xi8, #tpu.memory_space<vmem>>, %arg4: memref<2x4x1xf32, #tpu.memory_space<vmem>>, %arg5: memref<2x4x1xf32, #tpu.memory_space<vmem>>) attributes {dimension_semantics = [#tpu.dimension_semantics<parallel>, #tpu.dimension_semantics<arbitrary>], iteration_bounds = array<i64: 1, 1>, scalar_prefetch = 0 : i64, scratch_operands = 0 : i64, tpu.core_type = #tpu.core_type<tc>, window_params = [{transform_indices = @transform_0, window_bounds = array<i64: 2, 4, 256>}, {transform_indices = @transform_1, window_bounds = array<i64: 2, 1, 256>}, {transform_indices = @transform_2, window_bounds = array<i64: 2, 4, 1>}, {transform_indices = @transform_3, window_bounds = array<i64: 2, 4, 1>}]} {
    %c0_i32 = arith.constant 0 : i32
    %0 = arith.cmpi eq, %arg1, %c0_i32 : i32
    %1 = arith.extui %0 : i1 to i32
    %c0_i32_0 = arith.constant 0 : i32
    %2 = arith.cmpi ne, %1, %c0_i32_0 : i32
    scf.if %2 {
      %cst_46 = arith.constant 0.000000e+00 : f32
      %80 = vector.broadcast %cst_46 : f32 to vector<2x4x1xf32>
      %c0_47 = arith.constant 0 : index
      %c0_48 = arith.constant 0 : index
      %c0_49 = arith.constant 0 : index
      %81 = vector.load %arg4[%c0_47, %c0_48, %c0_49] : memref<2x4x1xf32, #tpu.memory_space<vmem>>, vector<2x4x1xf32>
      tpu.vector_store %arg4[%c0_47, %c0_48, %c0_49], %80 {strides = array<i32>} : memref<2x4x1xf32, #tpu.memory_space<vmem>>, vector<2x4x1xf32>,
      %cst_50 = arith.constant 0.000000e+00 : f32
      %82 = vector.broadcast %cst_50 : f32 to vector<2x4x1xf32>
      %c0_51 = arith.constant 0 : index
      %c0_52 = arith.constant 0 : index
      %c0_53 = arith.constant 0 : index
      %83 = vector.load %arg5[%c0_51, %c0_52, %c0_53] : memref<2x4x1xf32, #tpu.memory_space<vmem>>, vector<2x4x1xf32>
      tpu.vector_store %arg5[%c0_51, %c0_52, %c0_53], %82 {strides = array<i32>} : memref<2x4x1xf32, #tpu.memory_space<vmem>>, vector<2x4x1xf32>,
    } else {
    }
    %3 = tpu.iota {dimensions = array<i32: 0>} : vector<4x256xi32>
    %c0 = arith.constant 0 : index
    %c0_1 = arith.constant 0 : index
    %c0_2 = arith.constant 0 : index
    %4 = vector.load %arg2[%c0, %c0_1, %c0_2] : memref<2x4x256xf32, #tpu.memory_space<vmem>>, vector<1x4x256xf32>
    %5 = vector.shape_cast %4 : vector<1x4x256xf32> to vector<4x256xf32>
    %c0_3 = arith.constant 0 : index
    %c0_4 = arith.constant 0 : index
    %c0_5 = arith.constant 0 : index
    %6 = vector.load %arg3[%c0_3, %c0_4, %c0_5] : memref<2x1x256xi8, #tpu.memory_space<vmem>>, vector<1x1x256xi8>
    %7 = vector.shape_cast %6 : vector<1x1x256xi8> to vector<1x256xi8>
    %8 = arith.extsi %7 : vector<1x256xi8> to vector<1x256xi32>
    %cst = arith.constant dense<0xFF800000> : vector<256xf32>
    %9 = vector.multi_reduction <maximumf>, %5, %cst [0] : vector<4x256xf32> to vector<256xf32>
    %10 = vector.shape_cast %9 : vector<256xf32> to vector<1x256xf32>
    %11 = vector.broadcast %10 : vector<1x256xf32> to vector<4x256xf32>
    %12 = arith.subf %5, %11 : vector<4x256xf32>
    %13 = math.exp %12 : vector<4x256xf32>
    %cst_6 = arith.constant dense<0.000000e+00> : vector<256xf32>
    %14 = vector.multi_reduction <add>, %13, %cst_6 [0] : vector<4x256xf32> to vector<256xf32>
    %15 = vector.shape_cast %14 : vector<256xf32> to vector<1x256xf32>
    %16 = tpu.reciprocal %15 {approx = true} : vector<1x256xf32> -> vector<1x256xf32>
    %17 = vector.broadcast %16 : vector<1x256xf32> to vector<4x256xf32>
    %18 = arith.mulf %13, %17 : vector<4x256xf32>
    %19 = vector.broadcast %8 : vector<1x256xi32> to vector<4x256xi32>
    %20 = arith.cmpi eq, %3, %19 : vector<4x256xi32>
    %cst_7 = arith.constant 1.000000e+00 : f32
    %cst_8 = arith.constant 0.000000e+00 : f32
    %21 = vector.broadcast %cst_7 : f32 to vector<4x256xf32>
    %22 = vector.broadcast %cst_8 : f32 to vector<4x256xf32>
    %23 = arith.select %20, %21, %22 : vector<4x256xi1>, vector<4x256xf32>
    %c0_9 = arith.constant 0 : index
    %c0_10 = arith.constant 0 : index
    %c0_11 = arith.constant 0 : index
    %24 = vector.load %arg4[%c0_9, %c0_10, %c0_11] : memref<2x4x1xf32, #tpu.memory_space<vmem>>, vector<1x4x1xf32>
    %25 = vector.shape_cast %24 : vector<1x4x1xf32> to vector<4x1xf32>
    %26 = arith.mulf %18, %23 : vector<4x256xf32>
    %cst_12 = arith.constant dense<0.000000e+00> : vector<4xf32>
    %27 = vector.multi_reduction <add>, %26, %cst_12 [1] : vector<4x256xf32> to vector<4xf32>
    %28 = vector.shape_cast %27 : vector<4xf32> to vector<4x1xf32>
    %29 = arith.addf %25, %28 : vector<4x1xf32>
    %c0_13 = arith.constant 0 : index
    %c0_14 = arith.constant 0 : index
    %c0_15 = arith.constant 0 : index
    %30 = vector.load %arg4[%c0_13, %c0_14, %c0_15] : memref<2x4x1xf32, #tpu.memory_space<vmem>>, vector<1x4x1xf32>
    %31 = vector.shape_cast %30 : vector<1x4x1xf32> to vector<4x1xf32>
    %32 = vector.shape_cast %29 : vector<4x1xf32> to vector<1x4x1xf32>
    tpu.vector_store %arg4[%c0_13, %c0_14, %c0_15], %32 {strides = array<i32>} : memref<2x4x1xf32, #tpu.memory_space<vmem>>, vector<1x4x1xf32>,
    %c0_16 = arith.constant 0 : index
    %c0_17 = arith.constant 0 : index
    %c0_18 = arith.constant 0 : index
    %33 = vector.load %arg5[%c0_16, %c0_17, %c0_18] : memref<2x4x1xf32, #tpu.memory_space<vmem>>, vector<1x4x1xf32>
    %34 = vector.shape_cast %33 : vector<1x4x1xf32> to vector<4x1xf32>
    %35 = arith.addf %18, %23 : vector<4x256xf32>
    %cst_19 = arith.constant dense<0.000000e+00> : vector<4xf32>
    %36 = vector.multi_reduction <add>, %35, %cst_19 [1] : vector<4x256xf32> to vector<4xf32>
    %37 = vector.shape_cast %36 : vector<4xf32> to vector<4x1xf32>
    %38 = arith.addf %34, %37 : vector<4x1xf32>
    %c0_20 = arith.constant 0 : index
    %c0_21 = arith.constant 0 : index
    %c0_22 = arith.constant 0 : index
    %39 = vector.load %arg5[%c0_20, %c0_21, %c0_22] : memref<2x4x1xf32, #tpu.memory_space<vmem>>, vector<1x4x1xf32>
    %40 = vector.shape_cast %39 : vector<1x4x1xf32> to vector<4x1xf32>
    %41 = vector.shape_cast %38 : vector<4x1xf32> to vector<1x4x1xf32>
    tpu.vector_store %arg5[%c0_20, %c0_21, %c0_22], %41 {strides = array<i32>} : memref<2x4x1xf32, #tpu.memory_space<vmem>>, vector<1x4x1xf32>,
    %c1 = arith.constant 1 : index
    %c0_23 = arith.constant 0 : index
    %c0_24 = arith.constant 0 : index
    %42 = vector.load %arg2[%c1, %c0_23, %c0_24] : memref<2x4x256xf32, #tpu.memory_space<vmem>>, vector<1x4x256xf32>
    %43 = vector.shape_cast %42 : vector<1x4x256xf32> to vector<4x256xf32>
    %c1_25 = arith.constant 1 : index
    %c0_26 = arith.constant 0 : index
    %c0_27 = arith.constant 0 : index
    %44 = vector.load %arg3[%c1_25, %c0_26, %c0_27] : memref<2x1x256xi8, #tpu.memory_space<vmem>>, vector<1x1x256xi8>
    %45 = vector.shape_cast %44 : vector<1x1x256xi8> to vector<1x256xi8>
    %46 = arith.extsi %45 : vector<1x256xi8> to vector<1x256xi32>
    %cst_28 = arith.constant dense<0xFF800000> : vector<256xf32>
    %47 = vector.multi_reduction <maximumf>, %43, %cst_28 [0] : vector<4x256xf32> to vector<256xf32>
    %48 = vector.shape_cast %47 : vector<256xf32> to vector<1x256xf32>
    %49 = vector.broadcast %48 : vector<1x256xf32> to vector<4x256xf32>
    %50 = arith.subf %43, %49 : vector<4x256xf32>
    %51 = math.exp %50 : vector<4x256xf32>
    %cst_29 = arith.constant dense<0.000000e+00> : vector<256xf32>
    %52 = vector.multi_reduction <add>, %51, %cst_29 [0] : vector<4x256xf32> to vector<256xf32>
    %53 = vector.shape_cast %52 : vector<256xf32> to vector<1x256xf32>
    %54 = tpu.reciprocal %53 {approx = true} : vector<1x256xf32> -> vector<1x256xf32>
    %55 = vector.broadcast %54 : vector<1x256xf32> to vector<4x256xf32>
    %56 = arith.mulf %51, %55 : vector<4x256xf32>
    %57 = vector.broadcast %46 : vector<1x256xi32> to vector<4x256xi32>
    %58 = arith.cmpi eq, %3, %57 : vector<4x256xi32>
    %cst_30 = arith.constant 1.000000e+00 : f32
    %cst_31 = arith.constant 0.000000e+00 : f32
    %59 = vector.broadcast %cst_30 : f32 to vector<4x256xf32>
    %60 = vector.broadcast %cst_31 : f32 to vector<4x256xf32>
    %61 = arith.select %58, %59, %60 : vector<4x256xi1>, vector<4x256xf32>
    %c1_32 = arith.constant 1 : index
    %c0_33 = arith.constant 0 : index
    %c0_34 = arith.constant 0 : index
    %62 = vector.load %arg4[%c1_32, %c0_33, %c0_34] : memref<2x4x1xf32, #tpu.memory_space<vmem>>, vector<1x4x1xf32>
    %63 = vector.shape_cast %62 : vector<1x4x1xf32> to vector<4x1xf32>
    %64 = arith.mulf %56, %61 : vector<4x256xf32>
    %cst_35 = arith.constant dense<0.000000e+00> : vector<4xf32>
    %65 = vector.multi_reduction <add>, %64, %cst_35 [1] : vector<4x256xf32> to vector<4xf32>
    %66 = vector.shape_cast %65 : vector<4xf32> to vector<4x1xf32>
    %67 = arith.addf %63, %66 : vector<4x1xf32>
    %c1_36 = arith.constant 1 : index
    %c0_37 = arith.constant 0 : index
    %c0_38 = arith.constant 0 : index
    %68 = vector.load %arg4[%c1_36, %c0_37, %c0_38] : memref<2x4x1xf32, #tpu.memory_space<vmem>>, vector<1x4x1xf32>
    %69 = vector.shape_cast %68 : vector<1x4x1xf32> to vector<4x1xf32>
    %70 = vector.shape_cast %67 : vector<4x1xf32> to vector<1x4x1xf32>
    tpu.vector_store %arg4[%c1_36, %c0_37, %c0_38], %70 {strides = array<i32>} : memref<2x4x1xf32, #tpu.memory_space<vmem>>, vector<1x4x1xf32>,
    %c1_39 = arith.constant 1 : index
    %c0_40 = arith.constant 0 : index
    %c0_41 = arith.constant 0 : index
    %71 = vector.load %arg5[%c1_39, %c0_40, %c0_41] : memref<2x4x1xf32, #tpu.memory_space<vmem>>, vector<1x4x1xf32>
    %72 = vector.shape_cast %71 : vector<1x4x1xf32> to vector<4x1xf32>
    %73 = arith.addf %56, %61 : vector<4x256xf32>
    %cst_42 = arith.constant dense<0.000000e+00> : vector<4xf32>
    %74 = vector.multi_reduction <add>, %73, %cst_42 [1] : vector<4x256xf32> to vector<4xf32>
    %75 = vector.shape_cast %74 : vector<4xf32> to vector<4x1xf32>
    %76 = arith.addf %72, %75 : vector<4x1xf32>
    %c1_43 = arith.constant 1 : index
    %c0_44 = arith.constant 0 : index
    %c0_45 = arith.constant 0 : index
    %77 = vector.load %arg5[%c1_43, %c0_44, %c0_45] : memref<2x4x1xf32, #tpu.memory_space<vmem>>, vector<1x4x1xf32>
    %78 = vector.shape_cast %77 : vector<1x4x1xf32> to vector<4x1xf32>
    %79 = vector.shape_cast %76 : vector<4x1xf32> to vector<1x4x1xf32>
    tpu.vector_store %arg5[%c1_43, %c0_44, %c0_45], %79 {strides = array<i32>} : memref<2x4x1xf32, #tpu.memory_space<vmem>>, vector<1x4x1xf32>,
    return
  }
  func.func @transform_0(%arg0: i32, %arg1: i32) -> (i32, i32, i32) {
    %c0_i32 = arith.constant 0 : i32
    %c0_i32_0 = arith.constant 0 : i32
    return %arg0, %c0_i32, %arg1 : i32, i32, i32
  }
  func.func @transform_1(%arg0: i32, %arg1: i32) -> (i32, i32, i32) {
    %c0_i32 = arith.constant 0 : i32
    %c0_i32_0 = arith.constant 0 : i32
    return %arg0, %c0_i32, %arg1 : i32, i32, i32
  }
  func.func @transform_2(%arg0: i32, %arg1: i32) -> (i32, i32, i32) {
    %c0_i32 = arith.constant 0 : i32
    %c0_i32_0 = arith.constant 0 : i32
    %c0_i32_1 = arith.constant 0 : i32
    return %arg0, %c0_i32, %c0_i32_0 : i32, i32, i32
  }
  func.func @transform_3(%arg0: i32, %arg1: i32) -> (i32, i32, i32) {
    %c0_i32 = arith.constant 0 : i32
    %c0_i32_0 = arith.constant 0 : i32
    %c0_i32_1 = arith.constant 0 : i32
    return %arg0, %c0_i32, %c0_i32_0 : i32, i32, i32
  }
}

</mosaic_0001>

<bundles_post_ra>
// kernel: tpu_custom_call.1
= control target key start
LH: loop header
LB: loop body
LE: loop exit
PB: predicated region body
PF: predicated region fallthrough
CT: control target
= control target key end

     0   :  { %9 = vsyncpa [#allocation3], 0  ;;  %s298_s12 = smov [#allocation2]   ;;  %s417_s0 = inlined_call_operand.hbm [shape: f32[2,4,256], index: 0, kind: input, shape index: {}]   ;;  %s418_s1 = inlined_call_operand.vmem [shape: s8[2,1,256], index: 1, kind: input, shape index: {}]   ;;  %s419_s2 = inlined_call_operand.vmem [shape: f32[2,4,1], index: 2, kind: output, shape index: {0}]   ;;  %s420_s3 = inlined_call_operand.vmem [shape: f32[2,4,1], index: 3, kind: output, shape index: {1}]  }
   0x1   :  { %s15_s13 = sshll.u32 %s298_s12, 4  ;;  %s274_s16 = scalar_lea.hbm %s417_s0, 256  ;;  %s16_s13 = int_to_ptr.vmem [resolvable:$true] %s15_s13 }
   0x2   :  { %p275_p0 = scmp.ne.s32.totalorder %s417_s0, %s274_s16  ;;  %p278_p1 = scmp.lt.u32.totalorder %s274_s16, %s417_s0 }
   0x4   :  { %p280_p2 = pnand %p278_p1, %p275_p0 }
   0x6   :  { %283 = shalt.err (!%p280_p2)
}
   0x7   :  { %s284_s21 = scalar_lea.vmem %s16_s13, 256  ;;  %p289_p4 = scmp.lt.s32.totalorder %s16_s13, %s16_s13 }
   0x8   :  { %p285_p3 = scmp.ne.s32.totalorder %s16_s13, %s284_s21  ;;  %p290_p5 = scmp.lt.s32.totalorder %s284_s21, %s284_s21 }
   0xa   :  { %p291_p6 = por %p290_p5, %p289_p4 }
   0xc   :  { %p292_p7 = pnand %p291_p6, %p285_p3 }
   0xe   :  { %295 = shalt.err (!%p292_p7)
}
   0xf   :  { %s299_s22 = smov 128   ;;  %s300_s23 = smov 8  }
  0x10   :  { %21 = dma.hbm_to_vmem [thread:$0]  %s417_s0, 256, %s16_s13, [#allocation3], %s299_s22, %s299_s22, %s300_s23  }
  0x11   :  { %296 = dma.done.wait [#allocation3], 256  }
  0x12   :  { %297 = vsyncadd [#allocation3], 4294967040  ;;  %vm31_vm0 = vcmask 3072   ;;  %v301_v0 = vmov 0.0   ;;  %vm44_vm1 = vcmask 1043456   ;;  %v140_v1 = vld [vmem:[#allocation2 + $0x8] sm:$0xff]  ;;  %v36_v40 = vlaneseq }
  0x13   :  { %33 = vst.msk [vmem:[%s419_s2 + $0x4] sm:$0xf] %vm31_vm0, %v301_v0  ;;  %32 = vst.msk [vmem:[%s419_s2] sm:$0xf] %vm31_vm0, %v301_v0  ;;  %v38_v2 = vld [vmem:[#allocation2] sm:$0xff]  ;;  %v145_v3 = vcombine.high %v140_v1, %v140_v1  ;;  %v147_v4 = vsel %vm44_vm1, %v140_v1, -inf }
  0x14   :  { %34 = vst.msk [vmem:[%s420_s3] sm:$0xf] %vm31_vm0, %v301_v0  ;;  %35 = vst.msk [vmem:[%s420_s3 + $0x4] sm:$0xf] %vm31_vm0, %v301_v0  ;;  %v148_v5 = vrot.slane %v147_v4, 4  ;;  %v42_v6 = vcombine.high %v38_v2, %v38_v2  ;;  %v45_v7 = vsel %vm44_vm1, %v38_v2, -inf }
  0x15   :  { %v154_v8 = vsel %vm44_vm1, %v145_v3, -inf  ;;  %v46_v9 = vrot.slane %v45_v7, 4  ;;  %v37_v49 = vshrl.u32 %v36_v40, 7  ;;  %v251_v55 = vld [vmem:[%s418_s1] sm:$0xf]  }
  0x16   :  { %v149_v10 = vmax.f32 %v147_v4, %v148_v5  ;;  %v155_v11 = vrot.slane %v154_v8, 4  ;;  %v52_v12 = vsel %vm44_vm1, %v42_v6, -inf  ;;  %v40_v6 = vunpack.c.0.s8 %v251_v55 }
  0x17   :  { %v47_v13 = vmax.f32 %v45_v7, %v46_v9  ;;  %v53_v14 = vrot.slane %v52_v12, 4  ;;  %v92_v60 = vsub.s32 0, %v37_v49  ;;  %v96_v63 = vsub.s32 4, %v37_v49 }
  0x18   :  { %v150_v15 = vrot.slane %v149_v10, 2  ;;  %v156_v16 = vmax.f32 %v154_v8, %v155_v11 }
  0x19   :  { %v48_v17 = vrot.slane %v47_v13, 2  ;;  %v54_v18 = vmax.f32 %v52_v12, %v53_v14 }
  0x1a   :  { %v151_v19 = vmax.f32 %v149_v10, %v150_v15  ;;  %v157_v20 = vrot.slane %v156_v16, 2 }
  0x1b   :  { %v49_v21 = vmax.f32 %v47_v13, %v48_v17  ;;  %v55_v22 = vrot.slane %v54_v18, 2  ;;  %v97_v17 = vrot.slane %v40_v6, %v96_v63 }
  0x1c   :  { %v152_v23 = vrot.slane %v151_v19, 1  ;;  %v158_v24 = vmax.f32 %v156_v16, %v157_v20  ;;  %v93_v16 = vrot.slane %v40_v6, %v92_v60 }
  0x1d   :  { %v50_v25 = vrot.slane %v49_v21, 1  ;;  %v56_v26 = vmax.f32 %v54_v18, %v55_v22  ;;  %v105_v22 = vrot.slane %v97_v17, %v92_v60 }
  0x1e   :  { %v153_v27 = vmax.f32 %v151_v19, %v152_v23  ;;  %v159_v28 = vrot.slane %v158_v24, 1 }
  0x1f   :  { %v51_v29 = vmax.f32 %v49_v21, %v50_v25  ;;  %v57_v30 = vrot.slane %v56_v26, 1  ;;  %v101_v21 = vrot.slane %v93_v16, %v92_v60  ;;  %vm107_vm5 = vcmp.eq.s32.totalorder %v37_v49, %v105_v22 }
  0x20   :  { %v160_v31 = vmax.f32 %v158_v24, %v159_v28  ;;  %v109_v28 = vsel %vm107_vm5, 1.0, %v301_v0 }
  0x21   :  { %v58_v32 = vmax.f32 %v56_v26, %v57_v30  ;;  %vm106_vm4 = vcmp.eq.s32.totalorder %v37_v49, %v101_v21 }
  0x22   :  { %v163_v33 = vcombine.low %v153_v27, %v160_v31  ;;  %v108_v27 = vsel %vm106_vm4, 1.0, %v301_v0 }
  0x23   :  { %v61_v34 = vcombine.low %v51_v29, %v58_v32 }
  0x24   :  { %v165_v35 = vsub.f32 %v140_v1, %v163_v33  ;;  %v143_v1 = vunpack.c.1.s8 %v251_v55 }
  0x25   :  { %v63_v36 = vsub.f32 %v38_v2, %v61_v34  ;;  %v113_v34 = vcombine.low %v108_v27, %v109_v28 }
  0x26   :  { %v166_v37 = vmul.f32 1.442695, %v165_v35  ;;  %v195_v11 = vrot.slane %v143_v1, %v92_v60  ;;  %v199_v12 = vrot.slane %v143_v1, %v96_v63  ;;  %v127_v63 = vld [vmem:[%s420_s3] sm:$0xf] }
  0x27   :  { %v64_v38 = vmul.f32 1.442695, %v63_v36 }
  0x28   :  { %262 = vpow2.f32 %v166_v37  ;;  %v203_v19 = vrot.slane %v195_v11, %v92_v60  ;;  %v207_v20 = vrot.slane %v199_v12, %v92_v60 }
  0x29   :  { %264 = vpow2.f32 %v64_v38 }
  0x2a   :  { %vm208_vm2 = vcmp.eq.s32.totalorder %v37_v49, %v203_v19  ;;  %vm209_vm3 = vcmp.eq.s32.totalorder %v37_v49, %v207_v20 }
  0x2b   :  { %v210_v24 = vsel %vm208_vm2, 1.0, %v301_v0  ;;  %v211_v25 = vsel %vm209_vm3, 1.0, %v301_v0 }
  0x2c   :  { %v216_v32 = vcombine.low %v210_v24, %v211_v25 }
  0x32   :  { %v358_v39 = vpop.eup %262 }
  0x33   :  { %v360_v41 = vpop.eup %264  ;;  %v169_v42 = vcombine.high %v358_v39, %v358_v39  ;;  %v171_v43 = vsel %vm44_vm1, %v358_v39, 0.0 }
  0x34   :  { %v172_v44 = vrot.slane %v171_v43, 4  ;;  %v67_v45 = vcombine.high %v360_v41, %v360_v41  ;;  %v69_v46 = vsel %vm44_vm1, %v360_v41, 0.0 }
  0x35   :  { %v178_v47 = vsel %vm44_vm1, %v169_v42, 0.0  ;;  %v70_v48 = vrot.slane %v69_v46, 4 }
  0x36   :  { %v173_v50 = vadd.f32 %v172_v44, %v171_v43  ;;  %v179_v51 = vrot.slane %v178_v47, 4  ;;  %v76_v52 = vsel %vm44_vm1, %v67_v45, 0.0 }
  0x37   :  { %v71_v53 = vadd.f32 %v70_v48, %v69_v46  ;;  %v77_v54 = vrot.slane %v76_v52, 4 }
  0x38   :  { %v174_v56 = vrot.slane %v173_v50, 2  ;;  %v180_v57 = vadd.f32 %v179_v51, %v178_v47 }
  0x39   :  { %v72_v58 = vrot.slane %v71_v53, 2  ;;  %v78_v59 = vadd.f32 %v77_v54, %v76_v52 }
  0x3a   :  { %v175_v61 = vadd.f32 %v174_v56, %v173_v50  ;;  %v181_v62 = vrot.slane %v180_v57, 2  ;;  %v252_v56 = vld [vmem:[%s419_s2 + $0x4] sm:$0xf] }
  0x3b   :  { %v73_v2 = vadd.f32 %v72_v58, %v71_v53  ;;  %v79_v3 = vrot.slane %v78_v59, 2 }
  0x3c   :  { %v176_v4 = vrot.slane %v175_v61, 1  ;;  %v182_v5 = vadd.f32 %v181_v62, %v180_v57  ;;  %v110_v57 = vld [vmem:[%s419_s2] sm:$0xf]  ;;  %v254_v62 = vld [vmem:[%s420_s3 + $0x4] sm:$0xf] }
  0x3d   :  { %v74_v7 = vrot.slane %v73_v2, 1  ;;  %v80_v8 = vadd.f32 %v79_v3, %v78_v59 }
  0x3e   :  { %v177_v9 = vadd.f32 %v176_v4, %v175_v61  ;;  %v183_v10 = vrot.slane %v182_v5, 1 }
  0x3f   :  { %v75_v13 = vadd.f32 %v74_v7, %v73_v2  ;;  %v81_v14 = vrot.slane %v80_v8, 1 }
  0x40   :  { %v184_v15 = vadd.f32 %v183_v10, %v182_v5  ;;  %266 = vrcp.f32 %v177_v9 }
  0x41   :  { %v82_v18 = vadd.f32 %v81_v14, %v80_v8  ;;  %268 = vrcp.f32 %v75_v13 }
  0x42   :  { %270 = vrcp.f32 %v184_v15 }
  0x43   :  { %272 = vrcp.f32 %v82_v18 }
  0x4a   :  { %v267_v23 = vpop.eup %266 }
  0x4b   :  { %v269_v26 = vpop.eup %268 }
  0x4c   :  { %v271_v29 = vpop.eup %270 }
  0x4d   :  { %v273_v30 = vpop.eup %272  ;;  %v189_v31 = vcombine.low %v267_v23, %v271_v29 }
  0x4e   :  { %v87_v33 = vcombine.low %v269_v26, %v273_v30 }
  0x4f   :  { %v191_v35 = vmul.f32 %v358_v39, %v189_v31 }
  0x50   :  { %v89_v36 = vmul.f32 %v360_v41, %v87_v33 }
  0x51   :  { %v218_v37 = vmul.f32 %v216_v32, %v191_v35  ;;  %v231_v38 = vadd.f32 %v216_v32, %v191_v35 }
  0x52   :  { %v115_v40 = vmul.f32 %v113_v34, %v89_v36  ;;  %v128_v42 = vadd.f32 %v113_v34, %v89_v36 }
  0x53   :  { %v220_v43 = vcombine.high %v218_v37, %v218_v37  ;;  %v222_v44 = vsel %vm44_vm1, %v218_v37, 0.0  ;;  %v233_v45 = vcombine.high %v231_v38, %v231_v38  ;;  %v235_v49 = vsel %vm44_vm1, %v231_v38, 0.0 }
  0x54   :  { %v117_v46 = vcombine.high %v115_v40, %v115_v40  ;;  %v119_v0 = vsel %vm44_vm1, %v115_v40, 0.0  ;;  %v130_v47 = vcombine.high %v128_v42, %v128_v42  ;;  %v132_v51 = vsel %vm44_vm1, %v128_v42, 0.0 }
  0x55   :  { %v223_v48 = vsel %vm44_vm1, %v220_v43, 0.0  ;;  %v236_v39 = vsel %vm44_vm1, %v233_v45, 0.0 }
  0x56   :  { %v224_v50 = vadd.f32 %v223_v48, %v222_v44  ;;  %v120_v41 = vsel %vm44_vm1, %v117_v46, 0.0  ;;  %v133_v52 = vsel %vm44_vm1, %v130_v47, 0.0  ;;  %v237_v54 = vadd.f32 %v236_v39, %v235_v49 }
  0x57   :  { %v121_v53 = vadd.f32 %v120_v41, %v119_v0  ;;  %v134_v55 = vadd.f32 %v133_v52, %v132_v51 }
  0x58   :  { %225 = vadd.xlane.f32.xlu1 %v224_v50 }
  0x59   :  { %122 = vadd.xlane.f32.xlu0 %v121_v53 }
  0x5c   :  { %238 = vadd.xlane.f32.xlu1 %v237_v54 }
  0x5d   :  { %135 = vadd.xlane.f32.xlu0 %v134_v55 }
  0xe5   :  { %v226_v58 = vpop.xlane.xlu1 %225 }
  0xe6   :  { %v227_v59 = vadd.f32 %v252_v56, %v226_v58  ;;  %v123_v60 = vpop.xlane.xlu0 %122 }
  0xe7   :  { %v124_v61 = vadd.f32 %v123_v60, %v110_v57 }
  0xe8   :  { %253 = vst.msk [vmem:[%s419_s2 + $0x4] sm:$0xf] %vm31_vm0, %v227_v59 }
  0xe9   :  { %126 = vst.msk [vmem:[%s419_s2] sm:$0xf] %vm31_vm0, %v124_v61  ;;  %v239_v1 = vpop.xlane.xlu1 %238 }
  0xea   :  { %v240_v2 = vadd.f32 %v254_v62, %v239_v1  ;;  %v136_v3 = vpop.xlane.xlu0 %135 }
  0xeb   :  { %v137_v4 = vadd.f32 %v136_v3, %v127_v63 }
  0xec   :  { %255 = vst.msk [vmem:[%s420_s3 + $0x4] sm:$0xf] %vm31_vm0, %v240_v2 }
  0xed   :  { %138 = vst.msk [vmem:[%s420_s3] sm:$0xf] %vm31_vm0, %v137_v4 }
  0xee   :  { %250 = vsyncpa [#allocation3], 1 }

</bundles_post_ra>
